<compile_context>
chip_gen: v7x
topology: tpu7x:2x2x1
jax: 0.10.0
libtpu: 0.0.40
codegen_flags: <defaults>
</compile_context>

<pallas_src>
import jax
import jax.numpy as jnp
from jax import lax
from jax.experimental import pallas as pl
from jax.experimental.pallas import tpu as pltpu


_LANE = 128


def _round_up(n, m):
    return ((n + m - 1) // m) * m


def _fused_hyper_kernel(z_ref, w_ref, b_ref, o_ref):
    """out[m, n] = sum_d z[m, d] * w[d, n] + b[0, n]   (exact f32, VPU only).

    K (= z_dim = 8) is tiny, so an unrolled rank-1 accumulation on the VPU is
    exact f32 and avoids the MXU push/pop + result-FIFO latency entirely.
    """
    z = z_ref[...]                                    # (M, K) f32
    w = w_ref[...]                                    # (K, Np) f32
    m = z.shape[0]
    k = z.shape[1]
    acc = jnp.broadcast_to(b_ref[...], (m, w.shape[1]))   # bias init, (M, Np)
    for d in range(k):                                # static unroll, K = 8
        acc = acc + z[:, d:d + 1] * w[d:d + 1, :]
    o_ref[...] = acc


def fused_hyper_matmul(z_flat, w_pad, b_pad):
    """Gridless pallas_call: no grid, whole operands resident in VMEM, one call."""
    M, _ = z_flat.shape
    Np = w_pad.shape[1]
    return pl.pallas_call(
        _fused_hyper_kernel,
        out_shape=jax.ShapeDtypeStruct((M, Np), jnp.float32),
        in_specs=[
            pl.BlockSpec(memory_space=pltpu.MemorySpace.VMEM),
            pl.BlockSpec(memory_space=pltpu.MemorySpace.VMEM),
            pl.BlockSpec(memory_space=pltpu.MemorySpace.VMEM),
        ],
        out_specs=pl.BlockSpec(memory_space=pltpu.MemorySpace.VMEM),
    )(z_flat, w_pad, b_pad)


class HyperNetwork:
    """JAX port of the standard 2-layer hyper_net used with Embedding.

    forward(z): h_in  = (z @ w2 + b2).view(in_size, z_dim)
                h_fin =  h_in @ w1 + b1
                kernel = h_fin.view(out_size, in_size, f, f)
    The two affine layers are folded ONCE here into (w_comb, b_comb), padded to a
    lane multiple; forward() never re-does this work.
    """

    def __init__(self, key, f_size=3, z_dim=8, out_size=4, in_size=4):
        self.f_size, self.z_dim = f_size, z_dim
        self.out_size, self.in_size = out_size, in_size
        k1, k2, k3, k4 = jax.random.split(key, 4)
        fmod = lambda a: jnp.fmod(a, 2.0)  # mirrors torch.fmod(torch.randn(...), 2)
        self.w1 = fmod(jax.random.normal(k1, (z_dim, out_size * f_size * f_size), jnp.float32))
        self.b1 = fmod(jax.random.normal(k2, (out_size * f_size * f_size,), jnp.float32))
        self.w2 = fmod(jax.random.normal(k3, (z_dim, in_size * z_dim), jnp.float32))
        self.b2 = fmod(jax.random.normal(k4, (in_size * z_dim,), jnp.float32))

        # ---- one-time fold of the two affine layers (hoisted out of forward) ----
        ff = f_size * f_size
        self.n_flat = in_size * out_size * ff
        w_comb = jnp.einsum(
            "dip,pn->din",
            self.w2.reshape(z_dim, in_size, z_dim),
            self.w1,
            precision=lax.Precision.HIGHEST,
        ).reshape(z_dim, self.n_flat)
        b_comb = (
            jnp.einsum(
                "ip,pn->in",
                self.b2.reshape(in_size, z_dim),
                self.w1,
                precision=lax.Precision.HIGHEST,
            )
            + self.b1[None, :]
        ).reshape(1, self.n_flat)

        # Tail-pad N (144 -> 256) so the kernel's output stores are unmasked.
        # Live columns keep the flat (in, out*f*f) order (torch .view semantics);
        # the wrapper slices the padding off before any reshape.
        self.n_pad = max(_round_up(self.n_flat, _LANE), _LANE)
        pad = self.n_pad - self.n_flat
        self.w_comb = jnp.pad(w_comb, ((0, 0), (0, pad)))
        self.b_comb = jnp.pad(b_comb, ((0, 0), (0, pad)))


class Embedding:
    def __init__(self, key, z_num, z_dim):
        self.z_num = z_num
        self.z_dim = z_dim
        h, k = z_num
        # deterministic stand-in for ParameterList of fmod(randn(z_dim), 2)
        self.z_list = jnp.fmod(jax.random.normal(key, (h * k, z_dim), jnp.float32), 2.0)

    def forward(self, hyper_net: HyperNetwork, z_list):
        # z_list: (B, h*k, z_dim)
        # TODO(synk): the debug print() calls of the PyTorch forward are omitted.
        B = z_list.shape[0]
        h, k = self.z_num
        zd = self.z_dim
        ins, outs, f = hyper_net.in_size, hyper_net.out_size, hyper_net.f_size

        # --- hot path: all B*h*k hyper_net(z) calls = ONE lane-dense Pallas kernel ---
        z_flat = z_list.reshape(B * h * k, zd)                      # (M, z_dim)
        tiles_pad = fused_hyper_matmul(z_flat, hyper_net.w_comb, hyper_net.b_comb)
        tiles = tiles_pad[:, :hyper_net.n_flat]                     # drop tail padding

        # --- glue: per-tile .view(out,in,f,f), then cat(dim=1)/cat(dim=0)/stack ---
        kernels = tiles.reshape(B, h, k, outs, ins, f, f)
        out = jnp.transpose(kernels, (0, 1, 3, 2, 4, 5, 6))         # (B, h, out, k, in, f, f)
        out = out.reshape(B, h * outs, k * ins, f, f)
        return out


if __name__ == "__main__":
    key = jax.random.PRNGKey(0)
    k_emb, k_hyp, k_z = jax.random.split(key, 3)

    z_num = (2, 2)   # (h, k)
    z_dim = 8
    B = 2

    emb = Embedding(k_emb, z_num, z_dim)
    hyp = HyperNetwork(k_hyp, f_size=3, z_dim=z_dim, out_size=4, in_size=4)

    h, k = z_num
    # batched z_list argument of the forward: (B, h*k, z_dim)
    z_list = jnp.fmod(jax.random.normal(k_z, (B, h * k, z_dim), jnp.float32), 2.0)

    out = emb.forward(hyp, z_list)
    out = jax.block_until_ready(out)

    # pure-JAX reference reproducing the PyTorch nested-loop / cat / stack exactly
    # (sequential two-matmul path, full f32 precision).
    def hyper_ref(z):
        h_in = (
            jnp.matmul(z, hyp.w2, precision=lax.Precision.HIGHEST) + hyp.b2
        ).reshape(hyp.in_size, hyp.z_dim)
        h_fin = jnp.matmul(h_in, hyp.w1, precision=lax.Precision.HIGHEST) + hyp.b1
        return h_fin.reshape(hyp.out_size, hyp.in_size, hyp.f_size, hyp.f_size)

    g = []
    for b in range(B):
        ww = []
        for i in range(h):
            w = []
            for j in range(k):
                w.append(hyper_ref(z_list[b][i * k + j]))
            ww.append(jnp.concatenate(w, axis=1))
        g.append(jnp.concatenate(ww, axis=0))
    ref = jnp.stack(g)

    assert out.shape == (B, h * hyp.out_size, k * hyp.in_size, hyp.f_size, hyp.f_size), out.shape
    assert out.dtype == jnp.float32
    # tolerance accounts for the (mathematically exact) re-association of the two
    # affine layers into one combined weight, evaluated in f32.
    assert jnp.allclose(out, ref, atol=1e-4, rtol=1e-5), float(jnp.max(jnp.abs(out - ref)))
    print("KERNEL_OK")
</pallas_src>

<mosaic_0001>
module attributes {stable_mosaic.version = 11 : i64} {
  func.func @_fused_hyper_kernel(%arg0: memref<8x8xf32, #tpu.memory_space<vmem>>, %arg1: memref<8x256xf32, #tpu.memory_space<vmem>>, %arg2: memref<1x256xf32, #tpu.memory_space<vmem>>, %arg3: memref<8x256xf32, #tpu.memory_space<vmem>>) attributes {dimension_semantics = [], scalar_prefetch = 0 : i64, scratch_operands = 0 : i64, tpu.core_type = #tpu.core_type<tc>} {
    %c0 = arith.constant 0 : index
    %c0_0 = arith.constant 0 : index
    %0 = vector.load %arg0[%c0, %c0_0] : memref<8x8xf32, #tpu.memory_space<vmem>>, vector<8x8xf32>
    %c0_1 = arith.constant 0 : index
    %c0_2 = arith.constant 0 : index
    %1 = vector.load %arg1[%c0_1, %c0_2] : memref<8x256xf32, #tpu.memory_space<vmem>>, vector<8x256xf32>
    %c0_3 = arith.constant 0 : index
    %c0_4 = arith.constant 0 : index
    %2 = vector.load %arg2[%c0_3, %c0_4] : memref<1x256xf32, #tpu.memory_space<vmem>>, vector<1x256xf32>
    %3 = vector.shape_cast %2 : vector<1x256xf32> to vector<1x256xf32>
    %4 = vector.broadcast %3 : vector<1x256xf32> to vector<8x256xf32>
    %5 = vector.extract_strided_slice %0 {offsets = [0, 0], sizes = [8, 1], strides = [1, 1]} : vector<8x8xf32> to vector<8x1xf32>
    %6 = vector.extract_strided_slice %1 {offsets = [0, 0], sizes = [1, 256], strides = [1, 1]} : vector<8x256xf32> to vector<1x256xf32>
    %7 = vector.broadcast %5 : vector<8x1xf32> to vector<8x256xf32>
    %8 = vector.broadcast %6 : vector<1x256xf32> to vector<8x256xf32>
    %9 = arith.mulf %7, %8 : vector<8x256xf32>
    %10 = arith.addf %4, %9 : vector<8x256xf32>
    %11 = vector.extract_strided_slice %0 {offsets = [0, 1], sizes = [8, 1], strides = [1, 1]} : vector<8x8xf32> to vector<8x1xf32>
    %12 = vector.extract_strided_slice %1 {offsets = [1, 0], sizes = [1, 256], strides = [1, 1]} : vector<8x256xf32> to vector<1x256xf32>
    %13 = vector.broadcast %11 : vector<8x1xf32> to vector<8x256xf32>
    %14 = vector.broadcast %12 : vector<1x256xf32> to vector<8x256xf32>
    %15 = arith.mulf %13, %14 : vector<8x256xf32>
    %16 = arith.addf %10, %15 : vector<8x256xf32>
    %17 = vector.extract_strided_slice %0 {offsets = [0, 2], sizes = [8, 1], strides = [1, 1]} : vector<8x8xf32> to vector<8x1xf32>
    %18 = vector.extract_strided_slice %1 {offsets = [2, 0], sizes = [1, 256], strides = [1, 1]} : vector<8x256xf32> to vector<1x256xf32>
    %19 = vector.broadcast %17 : vector<8x1xf32> to vector<8x256xf32>
    %20 = vector.broadcast %18 : vector<1x256xf32> to vector<8x256xf32>
    %21 = arith.mulf %19, %20 : vector<8x256xf32>
    %22 = arith.addf %16, %21 : vector<8x256xf32>
    %23 = vector.extract_strided_slice %0 {offsets = [0, 3], sizes = [8, 1], strides = [1, 1]} : vector<8x8xf32> to vector<8x1xf32>
    %24 = vector.extract_strided_slice %1 {offsets = [3, 0], sizes = [1, 256], strides = [1, 1]} : vector<8x256xf32> to vector<1x256xf32>
    %25 = vector.broadcast %23 : vector<8x1xf32> to vector<8x256xf32>
    %26 = vector.broadcast %24 : vector<1x256xf32> to vector<8x256xf32>
    %27 = arith.mulf %25, %26 : vector<8x256xf32>
    %28 = arith.addf %22, %27 : vector<8x256xf32>
    %29 = vector.extract_strided_slice %0 {offsets = [0, 4], sizes = [8, 1], strides = [1, 1]} : vector<8x8xf32> to vector<8x1xf32>
    %30 = vector.extract_strided_slice %1 {offsets = [4, 0], sizes = [1, 256], strides = [1, 1]} : vector<8x256xf32> to vector<1x256xf32>
    %31 = vector.broadcast %29 : vector<8x1xf32> to vector<8x256xf32>
    %32 = vector.broadcast %30 : vector<1x256xf32> to vector<8x256xf32>
    %33 = arith.mulf %31, %32 : vector<8x256xf32>
    %34 = arith.addf %28, %33 : vector<8x256xf32>
    %35 = vector.extract_strided_slice %0 {offsets = [0, 5], sizes = [8, 1], strides = [1, 1]} : vector<8x8xf32> to vector<8x1xf32>
    %36 = vector.extract_strided_slice %1 {offsets = [5, 0], sizes = [1, 256], strides = [1, 1]} : vector<8x256xf32> to vector<1x256xf32>
    %37 = vector.broadcast %35 : vector<8x1xf32> to vector<8x256xf32>
    %38 = vector.broadcast %36 : vector<1x256xf32> to vector<8x256xf32>
    %39 = arith.mulf %37, %38 : vector<8x256xf32>
    %40 = arith.addf %34, %39 : vector<8x256xf32>
    %41 = vector.extract_strided_slice %0 {offsets = [0, 6], sizes = [8, 1], strides = [1, 1]} : vector<8x8xf32> to vector<8x1xf32>
    %42 = vector.extract_strided_slice %1 {offsets = [6, 0], sizes = [1, 256], strides = [1, 1]} : vector<8x256xf32> to vector<1x256xf32>
    %43 = vector.broadcast %41 : vector<8x1xf32> to vector<8x256xf32>
    %44 = vector.broadcast %42 : vector<1x256xf32> to vector<8x256xf32>
    %45 = arith.mulf %43, %44 : vector<8x256xf32>
    %46 = arith.addf %40, %45 : vector<8x256xf32>
    %47 = vector.extract_strided_slice %0 {offsets = [0, 7], sizes = [8, 1], strides = [1, 1]} : vector<8x8xf32> to vector<8x1xf32>
    %48 = vector.extract_strided_slice %1 {offsets = [7, 0], sizes = [1, 256], strides = [1, 1]} : vector<8x256xf32> to vector<1x256xf32>
    %49 = vector.broadcast %47 : vector<8x1xf32> to vector<8x256xf32>
    %50 = vector.broadcast %48 : vector<1x256xf32> to vector<8x256xf32>
    %51 = arith.mulf %49, %50 : vector<8x256xf32>
    %52 = arith.addf %46, %51 : vector<8x256xf32>
    %c0_5 = arith.constant 0 : index
    %c0_6 = arith.constant 0 : index
    %53 = vector.load %arg3[%c0_5, %c0_6] : memref<8x256xf32, #tpu.memory_space<vmem>>, vector<8x256xf32>
    tpu.vector_store %arg3[%c0_5, %c0_6], %52 {strides = array<i32>} : memref<8x256xf32, #tpu.memory_space<vmem>>, vector<8x256xf32>,
    return
  }
}

</mosaic_0001>

<bundles_post_ra>
// kernel: tpu_custom_call.1
= control target key start
LH: loop header
LB: loop body
LE: loop exit
PB: predicated region body
PF: predicated region fallthrough
CT: control target
= control target key end

     0   :  { %8 = vsyncpa [#allocation3], 0  ;;  %s363_s0 = inlined_call_operand.hbm [shape: f32[8,8], index: 0, kind: input, shape index: {}]   ;;  %s364_s1 = inlined_call_operand.hbm [shape: f32[8,256], index: 1, kind: input, shape index: {}]   ;;  %s365_s2 = inlined_call_operand.vmem [shape: f32[1,256], index: 2, kind: input, shape index: {}]   ;;  %s366_s3 = inlined_call_operand.hbm [shape: f32[8,256], index: 3, kind: output, shape index: {}]  }
   0x1   :  { %9 = vsyncpa [#allocation6], 0 }
   0x2   :  { %10 = vsyncpa [#allocation4], 0  ;;  %s293_s12 = smov [#allocation2]   ;;  %s294_s14 = smov [#allocation5]  }
   0x3   :  { %s17_s13 = sshll.u32 %s293_s12, 4  ;;  %s27_s15 = sshll.u32 %s294_s14, 4  ;;  %s18_s13 = int_to_ptr.vmem [resolvable:$true] %s17_s13  ;;  %s28_s15 = int_to_ptr.vmem [resolvable:$true] %s27_s15 }
   0x4   :  { %s221_s18 = scalar_lea.hbm %s363_s0, 128 }
   0x5   :  { %p222_p0 = scmp.ne.s32.totalorder %s363_s0, %s221_s18  ;;  %p225_p1 = scmp.lt.u32.totalorder %s221_s18, %s363_s0 }
   0x7   :  { %p227_p2 = pnand %p225_p1, %p222_p0 }
   0x9   :  { %230 = shalt.err (!%p227_p2)
}
   0xa   :  { %s231_s23 = scalar_lea.vmem %s18_s13, 128  ;;  %p236_p4 = scmp.lt.s32.totalorder %s18_s13, %s18_s13 }
   0xb   :  { %p232_p3 = scmp.ne.s32.totalorder %s18_s13, %s231_s23  ;;  %p237_p5 = scmp.lt.s32.totalorder %s231_s23, %s231_s23 }
   0xd   :  { %p238_p6 = por %p237_p5, %p236_p4 }
   0xf   :  { %p239_p7 = pnand %p238_p6, %p232_p3 }
  0x11   :  { %242 = shalt.err (!%p239_p7)
}
  0x12   :  { %20 = dma.hbm_to_vmem [thread:$0]  %s363_s0, 128, %s18_s13, [#allocation3]  }
  0x13   :  { %s243_s28 = scalar_lea.hbm %s364_s1, 256 }
  0x14   :  { %p244_p8 = scmp.ne.s32.totalorder %s364_s1, %s243_s28  ;;  %p247_p9 = scmp.lt.u32.totalorder %s243_s28, %s364_s1 }
  0x16   :  { %p249_p10 = pnand %p247_p9, %p244_p8 }
  0x18   :  { %252 = shalt.err (!%p249_p10)
}
  0x19   :  { %s253_s6 = scalar_lea.vmem %s28_s15, 256  ;;  %p258_p12 = scmp.lt.s32.totalorder %s28_s15, %s28_s15 }
  0x1a   :  { %p254_p11 = scmp.ne.s32.totalorder %s28_s15, %s253_s6  ;;  %p259_p13 = scmp.lt.s32.totalorder %s253_s6, %s253_s6 }
  0x1c   :  { %p260_p0 = por %p259_p13, %p258_p12 }
  0x1e   :  { %p261_p1 = pnand %p260_p0, %p254_p11 }
  0x20   :  { %264 = shalt.err (!%p261_p1)
}
  0x21   :  { %30 = dma.hbm_to_vmem [thread:$0]  %s364_s1, 256, %s28_s15, [#allocation6]  }
  0x22   :  { %287 = dma.done.wait [#allocation3], 128  }
  0x23   :  { %288 = vsyncadd [#allocation3], 4294967168 }
  0x24   :  { %289 = dma.done.wait [#allocation6], 256  }
  0x25   :  { %290 = vsyncadd [#allocation6], 4294967040  ;;  %v295_v0 = vmov 2   ;;  %v296_v1 = vmov 0   ;;  %v39_v2 = vld [vmem:[#allocation2] sm:$0xff]  ;;  %v297_v3 = vmov 3   ;;  %v44_v9 = vlaneseq }
  0x26   :  { %214 = vset.pattern.permute.xlu1 %v295_v0  ;;  %212 = vset.pattern.permute.xlu0 %v296_v1  ;;  %v298_v4 = vmov 1   ;;  %v299_v5 = vmov 4   ;;  %v300_v6 = vmov 5   ;;  %v301_v7 = vmov 6   ;;  %v40_v12 = vld [vmem:[#allocation5] sm:$0xff]  ;;  %v41_v13 = vld [vmem:[#allocation5 + $0x8] sm:$0xff] }
  0x27   :  { %88 = vperm.xlu1 %214, %v39_v2   ;;  %56 = vperm.xlu0 %212, %v39_v2   ;;  %v302_v8 = vmov 7   ;;  %v45_v10 = vshrl.u32 %v44_v9, 7  ;;  %v42_v15 = vld [vmem:[%s365_s2] sm:$0x3]  ;;  %s303_s2 = smov [#allocation7]  }
  0x28   :  { %s191_s9 = sshll.u32 %s303_s2, 4  ;;  %s192_s9 = int_to_ptr.vmem [resolvable:$true] %s191_s9 }
  0x29   :  { %v46_v11 = vsub.s32 0, %v45_v10  ;;  %v50_v14 = vsub.s32 1, %v45_v10  ;;  %v93_v18 = vsub.s32 2, %v45_v10  ;;  %v109_v25 = vsub.s32 3, %v45_v10  ;;  %s265_s10 = scalar_lea.vmem %s192_s9, 256  ;;  %p270_p3 = scmp.lt.s32.totalorder %s192_s9, %s192_s9 }
  0x2a   :  { %v125_v28 = vsub.s32 4, %v45_v10  ;;  %v141_v35 = vsub.s32 5, %v45_v10  ;;  %v157_v48 = vsub.s32 6, %v45_v10  ;;  %v173_v59 = vsub.s32 7, %v45_v10  ;;  %p266_p2 = scmp.ne.s32.totalorder %s192_s9, %s265_s10  ;;  %p271_p4 = scmp.lt.s32.totalorder %s265_s10, %s265_s10 }
  0x2b   :  { %215 = vset.pattern.permute.xlu1 %v297_v3  ;;  %213 = vset.pattern.permute.xlu0 %v298_v4  ;;  %v62_v16 = vrot.slane %v40_v12, %v46_v11  ;;  %v66_v17 = vrot.slane %v41_v13, %v46_v11  ;;  %v47_v20 = vrot.slane %v42_v15, %v46_v11 }
  0x2c   :  { %104 = vperm.xlu1 %215, %v39_v2   ;;  %72 = vperm.xlu0 %213, %v39_v2   ;;  %v51_v21 = vrot.slane %v42_v15, %v50_v14  ;;  %v78_v26 = vrot.slane %v40_v12, %v50_v14  ;;  %v82_v27 = vrot.slane %v41_v13, %v50_v14  ;;  %p272_p5 = por %p271_p4, %p270_p3 }
  0x2d   :  { %v94_v29 = vrot.slane %v40_v12, %v93_v18  ;;  %v98_v30 = vrot.slane %v41_v13, %v93_v18  ;;  %v110_v36 = vrot.slane %v40_v12, %v109_v25  ;;  %v114_v37 = vrot.slane %v41_v13, %v109_v25 }
  0x2e   :  { %v126_v40 = vrot.slane %v40_v12, %v125_v28  ;;  %v130_v41 = vrot.slane %v41_v13, %v125_v28  ;;  %v142_v46 = vrot.slane %v40_v12, %v141_v35  ;;  %v146_v47 = vrot.slane %v41_v13, %v141_v35  ;;  %p273_p6 = pnand %p272_p5, %p266_p2 }
  0x2f   :  { %v158_v62 = vrot.slane %v40_v12, %v157_v48  ;;  %v162_v63 = vrot.slane %v41_v13, %v157_v48  ;;  %v174_v3 = vrot.slane %v40_v12, %v173_v59  ;;  %v178_v4 = vrot.slane %v41_v13, %v173_v59 }
  0x30   :  { %216 = vset.pattern.permute.xlu1 %v299_v5  ;;  %217 = vset.pattern.permute.xlu0 %v300_v6 }
  0x31   :  { %120 = vperm.xlu1 %216, %v39_v2   ;;  %136 = vperm.xlu0 %217, %v39_v2  }
  0x35   :  { %218 = vset.pattern.permute.xlu1 %v301_v7  ;;  %220 = vset.pattern.permute.xlu0 %v302_v8 }
  0x36   :  { %152 = vperm.xlu1 %218, %v39_v2  }
  0x3a   :  { %219 = vset.pattern.permute.xlu1 %v302_v8 }
  0x3b   :  { %168 = vperm.xlu1 %219, %v39_v2  }
  0xa6   :  { %v89_v19 = vpop.permute.xlu1 %88  ;;  %v57_v22 = vpop.permute.xlu0 %56 }
  0xa7   :  { %v67_v23 = vmul.f32 %v62_v16, %v57_v22  ;;  %v68_v24 = vmul.f32 %v66_v17, %v57_v22  ;;  %v99_v42 = vmul.f32 %v94_v29, %v89_v19  ;;  %v100_v43 = vmul.f32 %v98_v30, %v89_v19 }
  0xa9   :  { %v69_v31 = vadd.f32 %v67_v23, %v47_v20  ;;  %v70_v32 = vadd.f32 %v68_v24, %v51_v21 }
  0xab   :  { %v105_v33 = vpop.permute.xlu1 %104  ;;  %v73_v34 = vpop.permute.xlu0 %72 }
  0xac   :  { %v83_v38 = vmul.f32 %v78_v26, %v73_v34  ;;  %v84_v39 = vmul.f32 %v82_v27, %v73_v34  ;;  %v115_v49 = vmul.f32 %v110_v36, %v105_v33  ;;  %v116_v50 = vmul.f32 %v114_v37, %v105_v33 }
  0xae   :  { %v85_v44 = vadd.f32 %v83_v38, %v69_v31  ;;  %v86_v45 = vadd.f32 %v84_v39, %v70_v32 }
  0xb0   :  { %v101_v51 = vadd.f32 %v99_v42, %v85_v44  ;;  %v102_v52 = vadd.f32 %v100_v43, %v86_v45  ;;  %v121_v53 = vpop.permute.xlu1 %120  ;;  %v137_v54 = vpop.permute.xlu0 %136 }
  0xb1   :  { %v131_v55 = vmul.f32 %v126_v40, %v121_v53  ;;  %v132_v56 = vmul.f32 %v130_v41, %v121_v53  ;;  %v147_v60 = vmul.f32 %v142_v46, %v137_v54  ;;  %v148_v61 = vmul.f32 %v146_v47, %v137_v54 }
  0xb2   :  { %v117_v57 = vadd.f32 %v115_v49, %v101_v51  ;;  %v118_v58 = vadd.f32 %v116_v50, %v102_v52 }
  0xb4   :  { %v133_v0 = vadd.f32 %v131_v55, %v117_v57  ;;  %v134_v1 = vadd.f32 %v132_v56, %v118_v58 }
  0xb5   :  { %v153_v2 = vpop.permute.xlu1 %152 }
  0xb6   :  { %v149_v5 = vadd.f32 %v147_v60, %v133_v0  ;;  %v150_v6 = vadd.f32 %v148_v61, %v134_v1  ;;  %v163_v7 = vmul.f32 %v158_v62, %v153_v2  ;;  %v164_v8 = vmul.f32 %v162_v63, %v153_v2 }
  0xb8   :  { %v165_v11 = vadd.f32 %v163_v7, %v149_v5  ;;  %v166_v14 = vadd.f32 %v164_v8, %v150_v6 }
  0xba   :  { %v169_v9 = vpop.permute.xlu1 %168 }
  0xbb   :  { %v179_v15 = vmul.f32 %v174_v3, %v169_v9  ;;  %v180_v10 = vmul.f32 %v178_v4, %v169_v9 }
  0xbd   :  { %v181_v16 = vadd.f32 %v179_v15, %v165_v11  ;;  %v182_v17 = vadd.f32 %v180_v10, %v166_v14 }
  0xbf   :  { %183 = vst [vmem:[#allocation7] sm:$0xff] %v181_v16  ;;  %184 = vst [vmem:[#allocation7 + $0x8] sm:$0xff] %v182_v17 }
  0xc0   :  { %276 = shalt.err (!%p273_p6)
}
  0xc1   :  { %s277_s13 = scalar_lea.hbm %s366_s3, 256 }
  0xc2   :  { %p278_p7 = scmp.ne.s32.totalorder %s366_s3, %s277_s13  ;;  %p281_p8 = scmp.lt.u32.totalorder %s277_s13, %s366_s3 }
  0xc4   :  { %p283_p9 = pnand %p281_p8, %p278_p7 }
  0xc6   :  { %286 = shalt.err (!%p283_p9)
}
  0xc7   :  { %194 = dma.vmem_to_hbm [thread:$0]  %s192_s9, 256, %s366_s3, [#allocation4]  }
  0xc8   :  { %291 = dma.done.wait [#allocation4], 256  }
  0xc9   :  { %292 = vsyncadd [#allocation4], 4294967040 }
  0xca   :  { %198 = vsyncpa [#allocation3], 1 }
  0xcb   :  { %199 = vsyncpa [#allocation6], 1 }
  0xcc   :  { %200 = vsyncpa [#allocation4], 1 }

</bundles_post_ra>
